<compile_context>
chip_gen: v7x
topology: tpu7x:2x2x1
jax: 0.10.0
libtpu: 0.0.40
codegen_flags: <defaults>
</compile_context>

<pallas_src>
import functools

import jax
import jax.numpy as jnp
from jax.experimental import pallas as pl
from jax.experimental.pallas import tpu as pltpu

_BN_EPS = 1e-5


def _ru(x, m):
    return ((x + m - 1) // m) * m


def _pad_to(x, rows, cols):
    r, c = x.shape
    if r == rows and c == cols:
        return x
    return jnp.pad(x, ((0, rows - r), (0, cols - c)))


# ---------------------------------------------------------------------------
# Tiled matmul kernel with fused bias / ReLU / GCN-mix epilogues.
# ---------------------------------------------------------------------------
def _mm_kernel(*refs, has_bias, epilogue, alpha):
    it = iter(refs)
    a_ref = next(it)
    b_ref = next(it)
    bias_ref = next(it) if has_bias else None
    e_ref = next(it) if epilogue == "mix" else None
    o_ref = next(it)
    acc_ref = next(it)

    k = pl.program_id(2)

    @pl.when(k == 0)
    def _():
        acc_ref[...] = jnp.zeros_like(acc_ref)

    acc_ref[...] += jnp.dot(a_ref[...], b_ref[...],
                            preferred_element_type=jnp.float32)

    @pl.when(k == pl.num_programs(2) - 1)
    def _():
        r = acc_ref[...]
        if has_bias:
            r = r + bias_ref[...]
        if epilogue == "relu":
            r = jnp.maximum(r, 0.0)
        elif epilogue == "mix":
            # (1-a)*gcn + a*gcn*fc  ==  gcn * ((1-a) + a*fc)
            r = r * ((1.0 - alpha) + alpha * e_ref[...])
        o_ref[...] = r.astype(o_ref.dtype)


def pallas_matmul(a, b, bias=None, e=None, epilogue="none", alpha=0.0):
    """out = epilogue(a @ b + bias).  Tiled, pipelined, f32 accumulation."""
    a = a.astype(jnp.float32)
    b = b.astype(jnp.float32)
    M, K = a.shape
    K2, N = b.shape
    assert K == K2
    if epilogue == "mix":
        assert e is not None

    tm = 128 if M > 128 else _ru(M, 8)
    tn = 256 if N > 256 else _ru(N, 128)
    tk = 256 if K > 256 else _ru(K, 128)
    Mp, Kp, Np = _ru(M, tm), _ru(K, tk), _ru(N, tn)

    inputs = [_pad_to(a, Mp, Kp), _pad_to(b, Kp, Np)]
    in_specs = [
        pl.BlockSpec((tm, tk), lambda i, j, k: (i, k)),
        pl.BlockSpec((tk, tn), lambda i, j, k: (k, j)),
    ]
    has_bias = bias is not None
    if has_bias:
        bias2 = bias.astype(jnp.float32).reshape(1, -1)
        inputs.append(_pad_to(bias2, 1, Np))
        in_specs.append(pl.BlockSpec((1, tn), lambda i, j, k: (0, j)))
    if epilogue == "mix":
        inputs.append(_pad_to(e.astype(jnp.float32), Mp, Np))
        in_specs.append(pl.BlockSpec((tm, tn), lambda i, j, k: (i, j)))

    kernel = functools.partial(_mm_kernel, has_bias=has_bias,
                               epilogue=epilogue, alpha=float(alpha))
    out = pl.pallas_call(
        kernel,
        out_shape=jax.ShapeDtypeStruct((Mp, Np), jnp.float32),
        grid=(Mp // tm, Np // tn, Kp // tk),
        in_specs=in_specs,
        out_specs=pl.BlockSpec((tm, tn), lambda i, j, k: (i, j)),
        scratch_shapes=[pltpu.VMEM((tm, tn), jnp.float32)],
        compiler_params=pltpu.CompilerParams(
            dimension_semantics=("parallel", "parallel", "arbitrary"),
            vmem_limit_bytes=32 * 1024 * 1024,
        ),
    )(*inputs)
    return out[:M, :N]


# ---------------------------------------------------------------------------
# Training-mode BatchNorm1d (batch statistics, biased variance, affine).
# Channel-tiled grid; full rows per block so the batch stats are exact.
# ---------------------------------------------------------------------------
def _bn_kernel(x_ref, gamma_ref, beta_ref, o_ref, *, eps):
    x = x_ref[...]
    mean = jnp.mean(x, axis=0, keepdims=True)
    xc = x - mean
    var = jnp.mean(xc * xc, axis=0, keepdims=True)
    o_ref[...] = xc * jax.lax.rsqrt(var + eps) * gamma_ref[...] + beta_ref[...]


def pallas_batchnorm_train(x, gamma, beta, eps=_BN_EPS):
    x = x.astype(jnp.float32)
    N, C = x.shape
    tc = 128 if C > 128 else C
    Cp = _ru(C, tc)
    xp = _pad_to(x, N, Cp)
    gp = _pad_to(gamma.astype(jnp.float32).reshape(1, -1), 1, Cp)
    bp = _pad_to(beta.astype(jnp.float32).reshape(1, -1), 1, Cp)
    out = pl.pallas_call(
        functools.partial(_bn_kernel, eps=eps),
        out_shape=jax.ShapeDtypeStruct((N, Cp), jnp.float32),
        grid=(Cp // tc,),
        in_specs=[
            pl.BlockSpec((N, tc), lambda j: (0, j)),
            pl.BlockSpec((1, tc), lambda j: (0, j)),
            pl.BlockSpec((1, tc), lambda j: (0, j)),
        ],
        out_specs=pl.BlockSpec((N, tc), lambda j: (0, j)),
        compiler_params=pltpu.CompilerParams(
            dimension_semantics=("parallel",),
            vmem_limit_bytes=32 * 1024 * 1024,
        ),
    )(xp, gp, bp)
    return out[:, :C]


# ---------------------------------------------------------------------------
# GEncoder forward.
# ---------------------------------------------------------------------------
def gencoder_forward(params, agg_c_lp, agg_d_lp, self_c_lp, self_d_lp,
                     cell_feat, drug_feat, alpha):
    # cell_fc = lc(fc_cell(cell_feat)); drug_fc = ld(fc_drug(drug_feat))
    cell_lin = pallas_matmul(cell_feat, params["w_fc_cell"].T,
                             bias=params["b_fc_cell"])
    drug_lin = pallas_matmul(drug_feat, params["w_fc_drug"].T,
                             bias=params["b_fc_drug"])
    cell_fc = pallas_batchnorm_train(cell_lin, params["bn_c_gamma"],
                                     params["bn_c_beta"])
    drug_fc = pallas_batchnorm_train(drug_lin, params["bn_d_gamma"],
                                     params["bn_d_beta"])

    # cell_gcn = self_c_lp @ cell_fc + agg_c_lp @ drug_fc, with the
    # (1-a)*gcn + a*gcn*fc mix fused into the matmul epilogue.
    a_cell = jnp.concatenate([self_c_lp, agg_c_lp], axis=1)
    x_cell = jnp.concatenate([cell_fc, drug_fc], axis=0)
    cell_mix = pallas_matmul(a_cell, x_cell, e=cell_fc,
                             epilogue="mix", alpha=alpha)

    a_drug = jnp.concatenate([self_d_lp, agg_d_lp], axis=1)
    x_drug = jnp.concatenate([drug_fc, cell_fc], axis=0)
    drug_mix = pallas_matmul(a_drug, x_drug, e=drug_fc,
                             epilogue="mix", alpha=alpha)

    # cell_emb = relu(lm_cell(cell_mix)); drug_emb = relu(lm_drug(drug_mix))
    cell_emb = pallas_matmul(cell_mix, params["w_lm_cell"].T,
                             bias=params["b_lm_cell"], epilogue="relu")
    drug_emb = pallas_matmul(drug_mix, params["w_lm_drug"].T,
                             bias=params["b_lm_drug"], epilogue="relu")
    return cell_emb, drug_emb


# ---------------------------------------------------------------------------
# Pure-JAX reference.
# ---------------------------------------------------------------------------
def _reference(params, agg_c_lp, agg_d_lp, self_c_lp, self_d_lp,
               cell_feat, drug_feat, alpha):
    def bn(x, g, b):
        mean = jnp.mean(x, axis=0, keepdims=True)
        var = jnp.mean((x - mean) ** 2, axis=0, keepdims=True)
        return (x - mean) / jnp.sqrt(var + _BN_EPS) * g + b

    cell_fc = bn(cell_feat @ params["w_fc_cell"].T + params["b_fc_cell"],
                 params["bn_c_gamma"], params["bn_c_beta"])
    drug_fc = bn(drug_feat @ params["w_fc_drug"].T + params["b_fc_drug"],
                 params["bn_d_gamma"], params["bn_d_beta"])
    cell_gcn = self_c_lp @ cell_fc + agg_c_lp @ drug_fc
    drug_gcn = self_d_lp @ drug_fc + agg_d_lp @ cell_fc
    cell_ni = cell_gcn * cell_fc
    drug_ni = drug_gcn * drug_fc
    cell_emb = jax.nn.relu(((1 - alpha) * cell_gcn + alpha * cell_ni)
                           @ params["w_lm_cell"].T + params["b_lm_cell"])
    drug_emb = jax.nn.relu(((1 - alpha) * drug_gcn + alpha * drug_ni)
                           @ params["w_lm_drug"].T + params["b_lm_drug"])
    return cell_emb, drug_emb


if __name__ == "__main__":
    key = jax.random.PRNGKey(0)
    n_cell, n_drug = 48, 24
    cell_dim, drug_dim = 40, 28
    layer_size = (32, 16)
    alpha = 0.3

    ks = jax.random.split(key, 16)

    # Node features.
    cell_feat = jax.random.normal(ks[0], (n_cell, cell_dim), jnp.float32)
    drug_feat = jax.random.normal(ks[1], (n_drug, drug_dim), jnp.float32)

    # Graph Laplacians, built exactly as ConstructAdjMatrix would (plain jnp;
    # diagonals folded as row/col scalings, agg_d = agg_c.T — no dense extras).
    adj = (jax.random.uniform(ks[2], (n_cell, n_drug)) < 0.3).astype(jnp.float32)
    row_sum = jnp.sum(adj, axis=1)
    col_sum = jnp.sum(adj, axis=0)
    dx = (row_sum + 1.0) ** -0.5
    dy = (col_sum + 1.0) ** -0.5
    agg_c_lp = dx[:, None] * adj * dy[None, :]
    agg_d_lp = agg_c_lp.T
    self_c_lp = jnp.diag(1.0 / (row_sum + 1.0) + 1.0)
    self_d_lp = jnp.diag(1.0 / (col_sum + 1.0) + 1.0)

    # Module parameters (PyTorch Linear convention: W is (out, in)).
    s = 0.1
    params = {
        "w_fc_cell": s * jax.random.normal(ks[3], (layer_size[0], cell_dim)),
        "b_fc_cell": s * jax.random.normal(ks[4], (layer_size[0],)),
        "w_fc_drug": s * jax.random.normal(ks[5], (layer_size[0], drug_dim)),
        "b_fc_drug": s * jax.random.normal(ks[6], (layer_size[0],)),
        "bn_c_gamma": 1.0 + s * jax.random.normal(ks[7], (layer_size[0],)),
        "bn_c_beta": s * jax.random.normal(ks[8], (layer_size[0],)),
        "bn_d_gamma": 1.0 + s * jax.random.normal(ks[9], (layer_size[0],)),
        "bn_d_beta": s * jax.random.normal(ks[10], (layer_size[0],)),
        "w_lm_cell": s * jax.random.normal(ks[11], (layer_size[1], layer_size[0])),
        "b_lm_cell": s * jax.random.normal(ks[12], (layer_size[1],)),
        "w_lm_drug": s * jax.random.normal(ks[13], (layer_size[1], layer_size[0])),
        "b_lm_drug": s * jax.random.normal(ks[14], (layer_size[1],)),
    }
    params = {k: v.astype(jnp.float32) for k, v in params.items()}

    outs = gencoder_forward(params, agg_c_lp, agg_d_lp, self_c_lp, self_d_lp,
                            cell_feat, drug_feat, alpha)
    outs = jax.block_until_ready(outs)

    refs = _reference(params, agg_c_lp, agg_d_lp, self_c_lp, self_d_lp,
                      cell_feat, drug_feat, alpha)
    refs = jax.block_until_ready(refs)

    for o, r in zip(outs, refs):
        assert o.shape == r.shape and o.dtype == r.dtype
        err = float(jnp.max(jnp.abs(o - r)))
        assert err < 2e-2, f"max abs error {err}"

    print("KERNEL_OK")
</pallas_src>

<mosaic_0001>
module attributes {stable_mosaic.version = 11 : i64} {
  func.func @_mm_kernel(%arg0: i32, %arg1: i32, %arg2: i32, %arg3: memref<48x128xf32, #tpu.memory_space<vmem>>, %arg4: memref<128x128xf32, #tpu.memory_space<vmem>>, %arg5: memref<1x128xf32, #tpu.memory_space<vmem>>, %arg6: memref<48x128xf32, #tpu.memory_space<vmem>>, %arg7: memref<48x128xf32, #tpu.memory_space<vmem>>) attributes {dimension_semantics = [#tpu.dimension_semantics<parallel>, #tpu.dimension_semantics<parallel>, #tpu.dimension_semantics<arbitrary>], iteration_bounds = array<i64: 1, 1, 1>, scalar_prefetch = 0 : i64, scratch_operands = 1 : i64, tpu.core_type = #tpu.core_type<tc>, window_params = [{transform_indices = @transform_0, window_bounds = array<i64: 48, 128>}, {transform_indices = @transform_1, window_bounds = array<i64: 128, 128>}, {transform_indices = @transform_2, window_bounds = array<i64: 1, 128>}, {transform_indices = @transform_3, window_bounds = array<i64: 48, 128>}]} {
    %c0_i32 = arith.constant 0 : i32
    %0 = arith.cmpi eq, %arg2, %c0_i32 : i32
    %1 = arith.extui %0 : i1 to i32
    %c0_i32_0 = arith.constant 0 : i32
    %2 = arith.cmpi ne, %1, %c0_i32_0 : i32
    scf.if %2 {
      %cst_10 = arith.constant 0.000000e+00 : f32
      %12 = vector.broadcast %cst_10 : f32 to vector<48x128xf32>
      %c0_11 = arith.constant 0 : index
      %c0_12 = arith.constant 0 : index
      %13 = vector.load %arg7[%c0_11, %c0_12] : memref<48x128xf32, #tpu.memory_space<vmem>>, vector<48x128xf32>
      tpu.vector_store %arg7[%c0_11, %c0_12], %12 {strides = array<i32>} : memref<48x128xf32, #tpu.memory_space<vmem>>, vector<48x128xf32>,
    } else {
    }
    %c0 = arith.constant 0 : index
    %c0_1 = arith.constant 0 : index
    %3 = vector.load %arg7[%c0, %c0_1] : memref<48x128xf32, #tpu.memory_space<vmem>>, vector<48x128xf32>
    %c0_2 = arith.constant 0 : index
    %c0_3 = arith.constant 0 : index
    %4 = vector.load %arg3[%c0_2, %c0_3] : memref<48x128xf32, #tpu.memory_space<vmem>>, vector<48x128xf32>
    %c0_4 = arith.constant 0 : index
    %c0_5 = arith.constant 0 : index
    %5 = vector.load %arg4[%c0_4, %c0_5] : memref<128x128xf32, #tpu.memory_space<vmem>>, vector<128x128xf32>
    %cst = arith.constant dense<0.000000e+00> : vector<48x128xf32>
    %6 = tpu.matmul %4, %5, %cst {dimension_numbers = #tpu.dot_dimension_numbers<[1], [0], [0], [1], [0, 0, 1, 1], [], []>} : vector<48x128xf32>, vector<128x128xf32>, vector<48x128xf32> -> vector<48x128xf32>
    %7 = arith.addf %3, %6 : vector<48x128xf32>
    %c0_6 = arith.constant 0 : index
    %c0_7 = arith.constant 0 : index
    %8 = vector.load %arg7[%c0_6, %c0_7] : memref<48x128xf32, #tpu.memory_space<vmem>>, vector<48x128xf32>
    tpu.vector_store %arg7[%c0_6, %c0_7], %7 {strides = array<i32>} : memref<48x128xf32, #tpu.memory_space<vmem>>, vector<48x128xf32>,
    %c0_i32_8 = arith.constant 0 : i32
    %9 = arith.cmpi eq, %arg2, %c0_i32_8 : i32
    %10 = arith.extui %9 : i1 to i32
    %c0_i32_9 = arith.constant 0 : i32
    %11 = arith.cmpi ne, %10, %c0_i32_9 : i32
    scf.if %11 {
      %c0_10 = arith.constant 0 : index
      %c0_11 = arith.constant 0 : index
      %12 = vector.load %arg7[%c0_10, %c0_11] : memref<48x128xf32, #tpu.memory_space<vmem>>, vector<48x128xf32>
      %c0_12 = arith.constant 0 : index
      %c0_13 = arith.constant 0 : index
      %13 = vector.load %arg5[%c0_12, %c0_13] : memref<1x128xf32, #tpu.memory_space<vmem>>, vector<1x128xf32>
      %14 = vector.broadcast %13 : vector<1x128xf32> to vector<48x128xf32>
      %15 = arith.addf %12, %14 : vector<48x128xf32>
      %c0_14 = arith.constant 0 : index
      %c0_15 = arith.constant 0 : index
      %16 = vector.load %arg6[%c0_14, %c0_15] : memref<48x128xf32, #tpu.memory_space<vmem>>, vector<48x128xf32>
      tpu.vector_store %arg6[%c0_14, %c0_15], %15 {strides = array<i32>} : memref<48x128xf32, #tpu.memory_space<vmem>>, vector<48x128xf32>,
    } else {
    }
    return
  }
  func.func @transform_0(%arg0: i32, %arg1: i32, %arg2: i32) -> (i32, i32) {
    %c0_i32 = arith.constant 0 : i32
    return %arg0, %arg2 : i32, i32
  }
  func.func @transform_1(%arg0: i32, %arg1: i32, %arg2: i32) -> (i32, i32) {
    %c0_i32 = arith.constant 0 : i32
    return %arg2, %arg1 : i32, i32
  }
  func.func @transform_2(%arg0: i32, %arg1: i32, %arg2: i32) -> (i32, i32) {
    %c0_i32 = arith.constant 0 : i32
    %c0_i32_0 = arith.constant 0 : i32
    return %c0_i32, %arg1 : i32, i32
  }
  func.func @transform_3(%arg0: i32, %arg1: i32, %arg2: i32) -> (i32, i32) {
    %c0_i32 = arith.constant 0 : i32
    return %arg0, %arg1 : i32, i32
  }
}

</mosaic_0001>

<bundles_post_ra>
// kernel: tpu_custom_call.1
= control target key start
LH: loop header
LB: loop body
LE: loop exit
PB: predicated region body
PF: predicated region fallthrough
CT: control target
= control target key end

     0   :  { %8 = vsyncpa [#allocation4], 0  ;;  %s496_s0 = inlined_call_operand.hbm [shape: f32[48,128], index: 0, kind: input, shape index: {}]   ;;  %s497_s1 = inlined_call_operand.hbm [shape: f32[128,128], index: 1, kind: input, shape index: {}]   ;;  %s498_s2 = inlined_call_operand.vmem [shape: f32[1,128], index: 2, kind: input, shape index: {}]   ;;  %s499_s3 = inlined_call_operand.hbm [shape: f32[48,128], index: 3, kind: output, shape index: {}]  }
   0x1   :  { %9 = vsyncpa [#allocation7], 0 }
   0x2   :  { %10 = vsyncpa [#allocation5], 0  ;;  %s423_s12 = smov [#allocation3]   ;;  %s351_s16 = scalar_lea.hbm %s496_s0, 768 }
   0x3   :  { %s16_s13 = sshll.u32 %s423_s12, 4  ;;  %p352_p0 = scmp.ne.s32.totalorder %s496_s0, %s351_s16  ;;  %s17_s13 = int_to_ptr.vmem [resolvable:$true] %s16_s13 }
   0x4   :  { %p355_p1 = scmp.lt.u32.totalorder %s351_s16, %s496_s0 }
   0x6   :  { %p357_p2 = pnand %p355_p1, %p352_p0 }
   0x8   :  { %360 = shalt.err (!%p357_p2)
}
   0x9   :  { %s361_s21 = scalar_lea.vmem %s17_s13, 768  ;;  %p366_p4 = scmp.lt.s32.totalorder %s17_s13, %s17_s13 }
   0xa   :  { %p362_p3 = scmp.ne.s32.totalorder %s17_s13, %s361_s21  ;;  %p367_p5 = scmp.lt.s32.totalorder %s361_s21, %s361_s21 }
   0xc   :  { %p368_p6 = por %p367_p5, %p366_p4 }
   0xe   :  { %p369_p7 = pnand %p368_p6, %p362_p3 }
  0x10   :  { %372 = shalt.err (!%p369_p7)
}
  0x11   :  { %s424_s22 = smov 128   ;;  %s425_s23 = smov 8  }
  0x12   :  { %22 = dma.hbm_to_vmem [thread:$0]  %s496_s0, 768, %s17_s13, [#allocation4], %s424_s22, %s424_s22, %s425_s23  }
  0x13   :  { %s426_s26 = smov [#allocation6]   ;;  %s373_s30 = scalar_lea.hbm %s497_s1, 2048 }
  0x14   :  { %s28_s27 = sshll.u32 %s426_s26, 4  ;;  %p374_p8 = scmp.ne.s32.totalorder %s497_s1, %s373_s30  ;;  %s29_s27 = int_to_ptr.vmem [resolvable:$true] %s28_s27 }
  0x15   :  { %p377_p9 = scmp.lt.u32.totalorder %s373_s30, %s497_s1 }
  0x17   :  { %p379_p10 = pnand %p377_p9, %p374_p8 }
  0x19   :  { %382 = shalt.err (!%p379_p10)
}
  0x1a   :  { %s383_s8 = scalar_lea.vmem %s29_s27, 2048  ;;  %p388_p12 = scmp.lt.s32.totalorder %s29_s27, %s29_s27 }
  0x1b   :  { %p384_p11 = scmp.ne.s32.totalorder %s29_s27, %s383_s8  ;;  %p389_p13 = scmp.lt.s32.totalorder %s383_s8, %s383_s8 }
  0x1d   :  { %p390_p0 = por %p389_p13, %p388_p12 }
  0x1f   :  { %p391_p1 = pnand %p390_p0, %p384_p11 }
  0x21   :  { %394 = shalt.err (!%p391_p1)
}
  0x22   :  { %34 = dma.hbm_to_vmem [thread:$0]  %s497_s1, 2048, %s29_s27, [#allocation7], %s424_s22, %s424_s22, %s425_s23  }
  0x23   :  { %417 = dma.done.wait [#allocation4], 768  }
  0x24   :  { %418 = vsyncadd [#allocation4], 4294966528 }
  0x25   :  { %419 = dma.done.wait [#allocation7], 2048  }
  0x26   :  { %420 = vsyncadd [#allocation7], 4294965248  ;;  %v65_v0 = vld [vmem:[#allocation6] sm:$0xff]  ;;  %v66_v1 = vld [vmem:[#allocation6 + $0x8] sm:$0xff]  ;;  %s427_s11 = smov [#allocation8]  }
  0x27   :  { %v67_v2 = vld [vmem:[#allocation6 + $0x10] sm:$0xff]  ;;  %v298_v3 = vpack.c.bf16 %v66_v1, %v65_v0  ;;  %v68_v4 = vld [vmem:[#allocation6 + $0x18] sm:$0xff]  ;;  %v69_v6 = vld [vmem:[#allocation6 + $0x20] sm:$0xff]  ;;  %s221_s12 = sshll.u32 %s427_s11, 4  ;;  %s222_s12 = int_to_ptr.vmem [resolvable:$true] %s221_s12 }
  0x28   :  { %v302_v5 = vpack.c.bf16 %v68_v4, %v67_v2  ;;  %v70_v7 = vld [vmem:[#allocation6 + $0x28] sm:$0xff]  ;;  %v61_v9 = vld [vmem:[#allocation3 + $0x10] sm:$0xff]  ;;  %v71_v10 = vld [vmem:[#allocation6 + $0x30] sm:$0xff]  ;;  %p400_p3 = scmp.lt.s32.totalorder %s222_s12, %s222_s12 }
  0x29   :  { %330 = vmatprep.subr.bf16.mxu1 %v298_v3  ;;  %299 = vmatprep.subr.bf16.mxu0 %v298_v3  ;;  %v306_v8 = vpack.c.bf16 %v70_v7, %v69_v6  ;;  %v72_v11 = vld [vmem:[#allocation6 + $0x38] sm:$0xff]  ;;  %v59_v12 = vld [vmem:[#allocation3] sm:$0xff]  ;;  %v73_v14 = vld [vmem:[#allocation6 + $0x40] sm:$0xff] }
  0x2a   :  { %338 = vmatpush3.bf16.msra.mxu1 %v298_v3  ;;  %301 = vmatpush3.bf16.msra.mxu0 %v298_v3  ;;  %v310_v13 = vpack.c.bf16 %v72_v11, %v71_v10  ;;  %v74_v15 = vld [vmem:[#allocation6 + $0x48] sm:$0xff]  ;;  %v75_v17 = vld [vmem:[#allocation6 + $0x50] sm:$0xff]  ;;  %v76_v18 = vld [vmem:[#allocation6 + $0x58] sm:$0xff] }
  0x2b   :  { %331 = vmatprep.subr.bf16.mxu1 %v302_v5  ;;  %303 = vmatprep.subr.bf16.mxu0 %v302_v5  ;;  %v314_v16 = vpack.c.bf16 %v74_v15, %v73_v14  ;;  %v318_v19 = vpack.c.bf16 %v76_v18, %v75_v17  ;;  %v77_v20 = vld [vmem:[#allocation6 + $0x60] sm:$0xff]  ;;  %v78_v21 = vld [vmem:[#allocation6 + $0x68] sm:$0xff]  ;;  %v79_v23 = vld [vmem:[#allocation6 + $0x70] sm:$0xff] }
  0x2c   :  { %292 = vmatprep.mubr.f32.mxu1 %v61_v9  ;;  %289 = vmatprep.mubr.f32.mxu0 %v59_v12  ;;  %v322_v22 = vpack.c.bf16 %v78_v21, %v77_v20  ;;  %v80_v24 = vld [vmem:[#allocation6 + $0x78] sm:$0xff]  ;;  %v62_v26 = vld [vmem:[#allocation3 + $0x18] sm:$0xff]  ;;  %v63_v28 = vld [vmem:[#allocation3 + $0x20] sm:$0xff] }
  0x2d   :  { %v326_v25 = vpack.c.bf16 %v80_v24, %v79_v23  ;;  %v60_v27 = vld [vmem:[#allocation3 + $0x8] sm:$0xff]  ;;  %v234_v30 = vld [vmem:[%s498_s2] ss:$0 sm:$0xff]  ;;  %s395_s2 = scalar_lea.vmem %s222_s12, 768 }
  0x2e   :  { %339 = vmatpush3.bf16.msra.mxu1 %v302_v5  ;;  %305 = vmatpush3.bf16.msra.mxu0 %v302_v5  ;;  %v64_v29 = vld [vmem:[#allocation3 + $0x28] sm:$0xff]  ;;  %p396_p2 = scmp.ne.s32.totalorder %s222_s12, %s395_s2  ;;  %p401_p4 = scmp.lt.s32.totalorder %s395_s2, %s395_s2 }
  0x2f   :  { %332 = vmatprep.subr.bf16.mxu1 %v306_v8  ;;  %307 = vmatprep.subr.bf16.mxu0 %v306_v8 }
  0x30   :  { %p402_p5 = por %p401_p4, %p400_p3 }
  0x32   :  { %340 = vmatpush3.bf16.msra.mxu1 %v306_v8  ;;  %309 = vmatpush3.bf16.msra.mxu0 %v306_v8  ;;  %p403_p6 = pnand %p402_p5, %p396_p2 }
  0x33   :  { %333 = vmatprep.subr.bf16.mxu1 %v310_v13  ;;  %311 = vmatprep.subr.bf16.mxu0 %v310_v13 }
  0x36   :  { %341 = vmatpush3.bf16.msra.mxu1 %v310_v13  ;;  %313 = vmatpush3.bf16.msra.mxu0 %v310_v13 }
  0x37   :  { %334 = vmatprep.subr.bf16.mxu1 %v314_v16  ;;  %315 = vmatprep.subr.bf16.mxu0 %v314_v16 }
  0x3a   :  { %342 = vmatpush3.bf16.msra.mxu1 %v314_v16  ;;  %317 = vmatpush3.bf16.msra.mxu0 %v314_v16 }
  0x3b   :  { %335 = vmatprep.subr.bf16.mxu1 %v318_v19  ;;  %319 = vmatprep.subr.bf16.mxu0 %v318_v19 }
  0x3e   :  { %343 = vmatpush3.bf16.msra.mxu1 %v318_v19  ;;  %321 = vmatpush3.bf16.msra.mxu0 %v318_v19 }
  0x3f   :  { %336 = vmatprep.subr.bf16.mxu1 %v322_v22  ;;  %323 = vmatprep.subr.bf16.mxu0 %v322_v22 }
  0x42   :  { %344 = vmatpush3.bf16.msra.mxu1 %v322_v22  ;;  %325 = vmatpush3.bf16.msra.mxu0 %v322_v22 }
  0x43   :  { %337 = vmatprep.subr.bf16.mxu1 %v326_v25  ;;  %327 = vmatprep.subr.bf16.mxu0 %v326_v25 }
  0x46   :  { %345 = vmatpush3.bf16.msra.mxu1 %v326_v25  ;;  %329 = vmatpush3.bf16.msra.mxu0 %v326_v25 }
  0x49   :  { %293 = vmatmul.mubr.f32.vlgmr.msra.gmra.mrb[0].mxu1 %v62_v26  ;;  %290 = vmatmul.mubr.f32.vlgmr.msra.gmra.mrb[0].mxu0 %v60_v27 }
  0x4a   :  { %295 = vmatprep.mubr.f32.mxu1 %v63_v28 }
  0x4d   :  { %296 = vmatmul.mubr.f32.gmra.mrb[2].mxu1 %v64_v29 }
 0x11c   :  { %v294_v31 = vpop.f32.mrb[0].mxu1  ;;  %v291_v32 = vpop.f32.mrb[0].mxu0 }
 0x11d   :  { %v207_v33 = vadd.f32 %v294_v31, %v234_v30  ;;  %v157_v34 = vpop.f32.mrb[1].mxu1  ;;  %v205_v35 = vadd.f32 %v291_v32, %v234_v30  ;;  %v147_v36 = vpop.f32.mrb[1].mxu0 }
 0x11e   :  { %v206_v37 = vadd.f32 %v234_v30, %v157_v34  ;;  %v204_v38 = vadd.f32 %v234_v30, %v147_v36 }
 0x11f   :  { %213 = vst [vmem:[#allocation8 + $0x18] sm:$0xff] %v207_v33  ;;  %211 = vst [vmem:[#allocation8 + $0x8] sm:$0xff] %v205_v35 }
 0x120   :  { %212 = vst [vmem:[#allocation8 + $0x10] sm:$0xff] %v206_v37  ;;  %210 = vst [vmem:[#allocation8] sm:$0xff] %v204_v38  ;;  %v297_v39 = vpop.f32.mrb[2].mxu1 }
 0x121   :  { %v209_v40 = vadd.f32 %v297_v39, %v234_v30  ;;  %v167_v41 = vpop.f32.mrb[3].mxu1 }
 0x122   :  { %v208_v42 = vadd.f32 %v234_v30, %v167_v41 }
 0x123   :  { %215 = vst [vmem:[#allocation8 + $0x28] sm:$0xff] %v209_v40 }
 0x124   :  { %214 = vst [vmem:[#allocation8 + $0x20] sm:$0xff] %v208_v42 }
 0x125   :  { %406 = shalt.err (!%p403_p6)
}
 0x126   :  { %s407_s15 = scalar_lea.hbm %s499_s3, 768 }
 0x127   :  { %p408_p7 = scmp.ne.s32.totalorder %s499_s3, %s407_s15  ;;  %p411_p8 = scmp.lt.u32.totalorder %s407_s15, %s499_s3 }
 0x129   :  { %p413_p9 = pnand %p411_p8, %p408_p7 }
 0x12b   :  { %416 = shalt.err (!%p413_p9)
}
 0x12c   :  { %227 = dma.vmem_to_hbm [thread:$0]  %s222_s12, 768, %s499_s3, [#allocation5], %s424_s22, %s424_s22, %s425_s23  }
 0x12d   :  { %421 = dma.done.wait [#allocation5], 768  }
 0x12e   :  { %422 = vsyncadd [#allocation5], 4294966528 }
 0x12f   :  { %231 = vsyncpa [#allocation4], 1 }
 0x130   :  { %232 = vsyncpa [#allocation7], 1 }
 0x131   :  { %233 = vsyncpa [#allocation5], 1 }

</bundles_post_ra>
